<compile_context>
chip_gen: v6e
topology: v6e:2x2x1
jax: 0.10.0
libtpu: 0.0.40
codegen_flags: <defaults>
</compile_context>

<pallas_src>
import math

import jax
import jax.numpy as jnp
from jax.experimental import pallas as pl
from jax.experimental.pallas import tpu as pltpu


HIDDEN = 128  # fixed by the torch Actor architecture


def _round_up(x: int, m: int) -> int:
    return ((x + m - 1) // m) * m


def init_actor_params(key, in_dim: int, init_w: float = 0.003,
                      hidden: int = HIDDEN, weight_dtype=jnp.bfloat16):
    """Deterministic init mirroring torch Actor.__init__:
       hidden layers: PyTorch default U(-1/sqrt(fan_in), 1/sqrt(fan_in));
       fc3_R / fc3_B: U(-init_w, init_w).  Weights stored (fan_in, fan_out) and
       packed into a single bf16 buffer; biases packed into one (3, hidden) f32."""
    ks = jax.random.split(key, 8)
    bnd1 = 1.0 / math.sqrt(in_dim)
    bnd2 = 1.0 / math.sqrt(hidden)
    u = lambda k, shape, b: jax.random.uniform(k, shape, jnp.float32, -b, b)

    w1 = u(ks[0], (in_dim, hidden), bnd1)
    b1 = u(ks[1], (hidden,), bnd1)
    w2 = u(ks[2], (hidden, hidden), bnd2)
    b2 = u(ks[3], (hidden,), bnd2)
    wR = u(ks[4], (hidden, 1), init_w)
    bR = u(ks[5], (1,), init_w)
    wB = u(ks[6], (hidden, 1), init_w)
    bB = u(ks[7], (1,), init_w)

    # Pad fan_in to a sublane multiple so static row-slices of the packed
    # buffer stay 8-aligned (zero rows contribute nothing).
    in_dim_p = _round_up(in_dim, 8)
    w1_p = jnp.zeros((in_dim_p, hidden), jnp.float32).at[:in_dim, :].set(w1)

    # Lane-dense fused head: column 0 = fc3_R weight, column 1 = fc3_B weight,
    # columns 2..hidden-1 = 0.
    wh_p = (jnp.zeros((hidden, hidden), jnp.float32)
            .at[:, 0].set(wR[:, 0]).at[:, 1].set(wB[:, 0]))

    # Single packed weight buffer: rows [0:in_dim_p]=w1, [in_dim_p:+H]=w2,
    # [in_dim_p+H:+2H]=head.
    w_packed = jnp.concatenate([w1_p, w2, wh_p], axis=0).astype(weight_dtype)

    # Packed biases (kept f32): row0=b1, row1=b2, row2=[bR, bB, 0, ...].
    head_bias_row = (jnp.zeros((hidden,), jnp.float32)
                     .at[0].set(bR[0]).at[1].set(bB[0]))
    biases = jnp.stack([b1, b2, head_bias_row], axis=0)  # (3, hidden) f32

    return {
        "w_packed": w_packed,       # (in_dim_p + 2*hidden, hidden) bf16
        "biases": biases,           # (3, hidden) f32
        "in_dim": in_dim,
        "in_dim_padded": in_dim_p,
        "hidden": hidden,
    }


def actor_forward(state, params, *, block_rows: int = 256):
    """state: (B, in_dim) f32.  Returns (u_R, u_B), each (B, 1) f32."""
    B, in_dim = state.shape
    H = params["hidden"]
    IN_P = params["in_dim_padded"]
    assert in_dim == params["in_dim"]

    # Pad feature dim only if init padded it (no-op when in_dim % 8 == 0).
    if in_dim != IN_P:
        state = jnp.pad(state, ((0, 0), (0, IN_P - in_dim)))

    # Batch tiling: stream blocks of rows through resident weights.
    tb = min(block_rows, _round_up(B, 8))
    Bp = _round_up(B, tb)
    if Bp != B:
        state = jnp.pad(state, ((0, Bp - B), (0, 0)))
    grid = (Bp // tb,)

    w_rows = IN_P + 2 * H

    def kernel(x_ref, w_ref, b_ref, o_ref):
        # In-kernel cast to the MXU operand dtype (free VPU filler).
        x = x_ref[...].astype(w_ref.dtype)                  # (tb, IN_P)

        # Static sub-views of the packed weight buffer (8-aligned rows).
        w1 = w_ref[0:IN_P, :]                               # (IN_P, H)
        w2 = w_ref[IN_P:IN_P + H, :]                        # (H, H)
        wh = w_ref[IN_P + H:IN_P + 2 * H, :]                # (H, H)

        b1 = b_ref[0:1, :]                                  # (1, H) f32
        b2 = b_ref[1:2, :]
        bh = b_ref[2:3, :]

        # hidden1 + ReLU (f32 accumulate, f32 activation — v5e-safe path)
        h1 = jnp.dot(x, w1, preferred_element_type=jnp.float32) + b1
        h1 = jnp.maximum(h1, 0.0)

        # hidden2 + ReLU
        h2 = jnp.dot(h1.astype(w_ref.dtype), w2,
                     preferred_element_type=jnp.float32) + b2
        h2 = jnp.maximum(h2, 0.0)

        # fused lane-dense heads: one (H, H) matmul, one tanh, one dense store
        heads = jnp.dot(h2.astype(w_ref.dtype), wh,
                        preferred_element_type=jnp.float32) + bh
        o_ref[...] = jnp.tanh(heads)                        # (tb, H) f32

    out = pl.pallas_call(
        kernel,
        out_shape=jax.ShapeDtypeStruct((Bp, H), jnp.float32),
        grid=grid,
        in_specs=[
            pl.BlockSpec((tb, IN_P), lambda i: (i, 0)),     # batch block
            pl.BlockSpec((w_rows, H), lambda i: (0, 0)),    # weights: resident
            pl.BlockSpec((3, H), lambda i: (0, 0)),         # biases:  resident
        ],
        out_specs=pl.BlockSpec((tb, H), lambda i: (i, 0)),
        compiler_params=pltpu.CompilerParams(
            dimension_semantics=("parallel",)),             # v7x 2nd TC at large B
    )(state, params["w_packed"], params["biases"])

    out = out[:B]
    return out[:, 0:1], out[:, 1:2]


if __name__ == "__main__":
    key = jax.random.PRNGKey(0)
    k_params, k_state = jax.random.split(key)

    # Small demo shapes; hidden=128 is fixed by the Actor architecture.
    B, in_dim = 16, 16
    params = init_actor_params(k_params, in_dim)
    state = jax.random.normal(k_state, (B, in_dim), jnp.float32)

    u_R, u_B = actor_forward(state, params)
    jax.block_until_ready((u_R, u_B))

    # Pure-JAX reference following the same bf16-operand / f32-accumulate path.
    IN_P, H = params["in_dim_padded"], params["hidden"]
    wp, bp = params["w_packed"], params["biases"]
    xp = state if in_dim == IN_P else jnp.pad(state, ((0, 0), (0, IN_P - in_dim)))
    xb = xp.astype(wp.dtype)
    w1, w2, wh = wp[:IN_P], wp[IN_P:IN_P + H], wp[IN_P + H:IN_P + 2 * H]
    h1 = jnp.maximum(
        jnp.dot(xb, w1, preferred_element_type=jnp.float32) + bp[0:1, :], 0.0)
    h2 = jnp.maximum(
        jnp.dot(h1.astype(wp.dtype), w2,
                preferred_element_type=jnp.float32) + bp[1:2, :], 0.0)
    heads = jnp.tanh(
        jnp.dot(h2.astype(wp.dtype), wh,
                preferred_element_type=jnp.float32) + bp[2:3, :])
    ref_R, ref_B = heads[:, 0:1], heads[:, 1:2]

    assert u_R.shape == (B, 1) and u_B.shape == (B, 1)
    assert jnp.allclose(u_R, ref_R, atol=5e-3), "u_R mismatch"
    assert jnp.allclose(u_B, ref_B, atol=5e-3), "u_B mismatch"

    print("KERNEL_OK")
</pallas_src>

<mosaic_0001>
module attributes {stable_mosaic.version = 11 : i64} {
  func.func @kernel(%arg0: i32, %arg1: memref<16x16xf32, #tpu.memory_space<vmem>>, %arg2: memref<272x128xbf16, #tpu.memory_space<vmem>>, %arg3: memref<3x128xf32, #tpu.memory_space<vmem>>, %arg4: memref<16x128xf32, #tpu.memory_space<vmem>>) attributes {dimension_semantics = [#tpu.dimension_semantics<parallel>], iteration_bounds = array<i64: 1>, scalar_prefetch = 0 : i64, scratch_operands = 0 : i64, tpu.core_type = #tpu.core_type<tc>, window_params = [{transform_indices = @transform_0, window_bounds = array<i64: 16, 16>}, {pipeline_mode = #tpu.pipeline_mode<synchronous>, transform_indices = @transform_1, window_bounds = array<i64: 272, 128>}, {pipeline_mode = #tpu.pipeline_mode<synchronous>, transform_indices = @transform_2, window_bounds = array<i64: 3, 128>}, {transform_indices = @transform_3, window_bounds = array<i64: 16, 128>}]} {
    %c0 = arith.constant 0 : index
    %c0_0 = arith.constant 0 : index
    %0 = vector.load %arg1[%c0, %c0_0] : memref<16x16xf32, #tpu.memory_space<vmem>>, vector<16x16xf32>
    %1 = arith.truncf %0 : vector<16x16xf32> to vector<16x16xbf16>
    %c0_1 = arith.constant 0 : index
    %c0_2 = arith.constant 0 : index
    %2 = vector.load %arg2[%c0_1, %c0_2] : memref<272x128xbf16, #tpu.memory_space<vmem>>, vector<16x128xbf16>
    %c16 = arith.constant 16 : index
    %c0_3 = arith.constant 0 : index
    %3 = vector.load %arg2[%c16, %c0_3] : memref<272x128xbf16, #tpu.memory_space<vmem>>, vector<128x128xbf16>
    %c144 = arith.constant 144 : index
    %c0_4 = arith.constant 0 : index
    %4 = vector.load %arg2[%c144, %c0_4] : memref<272x128xbf16, #tpu.memory_space<vmem>>, vector<128x128xbf16>
    %c0_5 = arith.constant 0 : index
    %c0_6 = arith.constant 0 : index
    %5 = vector.load %arg3[%c0_5, %c0_6] : memref<3x128xf32, #tpu.memory_space<vmem>>, vector<1x128xf32>
    %c1 = arith.constant 1 : index
    %c0_7 = arith.constant 0 : index
    %6 = vector.load %arg3[%c1, %c0_7] : memref<3x128xf32, #tpu.memory_space<vmem>>, vector<1x128xf32>
    %c2 = arith.constant 2 : index
    %c0_8 = arith.constant 0 : index
    %7 = vector.load %arg3[%c2, %c0_8] : memref<3x128xf32, #tpu.memory_space<vmem>>, vector<1x128xf32>
    %cst = arith.constant dense<0.000000e+00> : vector<16x128xf32>
    %8 = tpu.matmul %1, %2, %cst {dimension_numbers = #tpu.dot_dimension_numbers<[1], [0], [0], [1], [0, 0, 1, 1], [], []>} : vector<16x16xbf16>, vector<16x128xbf16>, vector<16x128xf32> -> vector<16x128xf32>
    %9 = vector.broadcast %5 : vector<1x128xf32> to vector<16x128xf32>
    %10 = arith.addf %8, %9 : vector<16x128xf32>
    %cst_9 = arith.constant 0.000000e+00 : f32
    %11 = vector.broadcast %cst_9 : f32 to vector<16x128xf32>
    %12 = arith.maximumf %10, %11 : vector<16x128xf32>
    %13 = arith.truncf %12 : vector<16x128xf32> to vector<16x128xbf16>
    %cst_10 = arith.constant dense<0.000000e+00> : vector<16x128xf32>
    %14 = tpu.matmul %13, %3, %cst_10 {dimension_numbers = #tpu.dot_dimension_numbers<[1], [0], [0], [1], [0, 0, 1, 1], [], []>} : vector<16x128xbf16>, vector<128x128xbf16>, vector<16x128xf32> -> vector<16x128xf32>
    %15 = vector.broadcast %6 : vector<1x128xf32> to vector<16x128xf32>
    %16 = arith.addf %14, %15 : vector<16x128xf32>
    %cst_11 = arith.constant 0.000000e+00 : f32
    %17 = vector.broadcast %cst_11 : f32 to vector<16x128xf32>
    %18 = arith.maximumf %16, %17 : vector<16x128xf32>
    %19 = arith.truncf %18 : vector<16x128xf32> to vector<16x128xbf16>
    %cst_12 = arith.constant dense<0.000000e+00> : vector<16x128xf32>
    %20 = tpu.matmul %19, %4, %cst_12 {dimension_numbers = #tpu.dot_dimension_numbers<[1], [0], [0], [1], [0, 0, 1, 1], [], []>} : vector<16x128xbf16>, vector<128x128xbf16>, vector<16x128xf32> -> vector<16x128xf32>
    %21 = vector.broadcast %7 : vector<1x128xf32> to vector<16x128xf32>
    %22 = arith.addf %20, %21 : vector<16x128xf32>
    %23 = math.tanh %22 : vector<16x128xf32>
    %c0_13 = arith.constant 0 : index
    %c0_14 = arith.constant 0 : index
    %24 = vector.load %arg4[%c0_13, %c0_14] : memref<16x128xf32, #tpu.memory_space<vmem>>, vector<16x128xf32>
    tpu.vector_store %arg4[%c0_13, %c0_14], %23 {strides = array<i32>} : memref<16x128xf32, #tpu.memory_space<vmem>>, vector<16x128xf32>,
    return
  }
  func.func @transform_0(%arg0: i32) -> (i32, i32) {
    %c0_i32 = arith.constant 0 : i32
    %c0_i32_0 = arith.constant 0 : i32
    return %arg0, %c0_i32 : i32, i32
  }
  func.func @transform_1(%arg0: i32) -> (i32, i32) {
    %c0_i32 = arith.constant 0 : i32
    %c0_i32_0 = arith.constant 0 : i32
    %c0_i32_1 = arith.constant 0 : i32
    return %c0_i32, %c0_i32_0 : i32, i32
  }
  func.func @transform_2(%arg0: i32) -> (i32, i32) {
    %c0_i32 = arith.constant 0 : i32
    %c0_i32_0 = arith.constant 0 : i32
    %c0_i32_1 = arith.constant 0 : i32
    return %c0_i32, %c0_i32_0 : i32, i32
  }
  func.func @transform_3(%arg0: i32) -> (i32, i32) {
    %c0_i32 = arith.constant 0 : i32
    %c0_i32_0 = arith.constant 0 : i32
    return %arg0, %c0_i32 : i32, i32
  }
}

</mosaic_0001>

<bundles_post_ra>
// kernel: tpu_custom_call.1
= control target key start
LH: loop header
LB: loop body
LE: loop exit
PB: predicated region body
PF: predicated region fallthrough
CT: control target
= control target key end

     0   :  { %8 = vsyncpa [#allocation3], 0  ;;  %s639_s0 = inlined_call_operand.hbm [shape: f32[16,16], index: 0, kind: input, shape index: {}]   ;;  %s640_s1 = inlined_call_operand.hbm [shape: bf16[272,128], index: 1, kind: input, shape index: {}]   ;;  %s641_s2 = inlined_call_operand.hbm [shape: f32[3,128], index: 2, kind: input, shape index: {}]   ;;  %s642_s3 = inlined_call_operand.hbm [shape: f32[16,128], index: 3, kind: output, shape index: {}]  }
   0x1   :  { %9 = vsyncpa [#allocation6], 0 }
   0x2   :  { %10 = vsyncpa [#allocation4], 0  ;;  %s568_s12 = smov [#allocation5]  }
   0x3   :  { %s28_s13 = sshll.u32 %s568_s12, 4  ;;  %s29_s13 = int_to_ptr.vmem [resolvable:$true] %s28_s13 }
   0x4   :  { %s490_s14 = scalar_lea.vmem %s29_s13, 2176  ;;  %p495_p1 = scmp.lt.s32.totalorder %s29_s13, %s29_s13 }
   0x5   :  { %p491_p0 = scmp.ne.s32.totalorder %s29_s13, %s490_s14  ;;  %p496_p2 = scmp.lt.s32.totalorder %s490_s14, %s490_s14 }
   0x7   :  { %p497_p3 = por %p496_p2, %p495_p1 }
   0x9   :  { %p498_p4 = pnand %p497_p3, %p491_p0 }
   0xb   :  { %501 = shalt.err (!%p498_p4)
}
   0xc   :  { %s569_s15 = smov 64   ;;  %s570_s16 = smov 4  }
   0xd   :  { %34 = dma.hbm_to_vmem [thread:$0]  %s640_s1, 2176, %s29_s13, [#allocation6], %s569_s15, %s569_s15, %s570_s16  }
   0xe   :  { %s571_s19 = smov [#allocation2]  }
   0xf   :  { %s16_s20 = sshll.u32 %s571_s19, 4  ;;  %s17_s20 = int_to_ptr.vmem [resolvable:$true] %s16_s20 }
  0x10   :  { %s510_s21 = scalar_lea.vmem %s17_s20, 256  ;;  %p515_p6 = scmp.lt.s32.totalorder %s17_s20, %s17_s20 }
  0x11   :  { %p511_p5 = scmp.ne.s32.totalorder %s17_s20, %s510_s21  ;;  %p516_p7 = scmp.lt.s32.totalorder %s510_s21, %s510_s21 }
  0x13   :  { %p517_p8 = por %p516_p7, %p515_p6 }
  0x15   :  { %p518_p9 = pnand %p517_p8, %p511_p5 }
  0x17   :  { %521 = shalt.err (!%p518_p9)
}
  0x18   :  { %s572_s22 = smov 128   ;;  %s573_s23 = smov 8  }
  0x19   :  { %22 = dma.hbm_to_vmem [thread:$0]  %s639_s0, 256, %s17_s20, [#allocation3], %s572_s22, %s572_s22, %s573_s23  }
  0x1a   :  { %s574_s1 = smov [#allocation7]  }
  0x1b   :  { %s41_s26 = sshll.u32 %s574_s1, 4  ;;  %s42_s26 = int_to_ptr.vmem [resolvable:$true] %s41_s26 }
  0x1c   :  { %s530_s27 = scalar_lea.vmem %s42_s26, 64  ;;  %p535_p11 = scmp.lt.s32.totalorder %s42_s26, %s42_s26 }
  0x1d   :  { %p531_p10 = scmp.ne.s32.totalorder %s42_s26, %s530_s27  ;;  %p536_p12 = scmp.lt.s32.totalorder %s530_s27, %s530_s27 }
  0x1f   :  { %p537_p13 = por %p536_p12, %p535_p11 }
  0x21   :  { %p538_p0 = pnand %p537_p13, %p531_p10 }
  0x23   :  { %541 = shalt.err (!%p538_p0)
}
  0x24   :  { %44 = dma.hbm_to_vmem [thread:$0]  %s641_s2, 64, %s42_s26, [#allocation6]  }
  0x25   :  { %562 = dma.done.wait [#allocation3], 256  }
  0x26   :  { %563 = vsyncadd [#allocation3], 4294967040 }
  0x27   :  { %564 = dma.done.wait [#allocation6], 2240  }
  0x28   :  { %565 = vsyncadd [#allocation6], 4294965056  ;;  %v575_v0 = vmov 0.0   ;;  %vm576_vm0 = vmmov 0   ;;  %v461_v1 = vld [vmem:[#allocation5] sm:$0xff]   ;;  %v55_v2 = vld [vmem:[#allocation2] sm:$0xff] }
  0x29   :  { %405 = vmatprep.subr.bf16.mxu0 %v575_v0  ;;  %407 = vmatprep.mubr.msk.bf16.mxu0 %vm576_vm0, %v575_v0  ;;  %v56_v3 = vld [vmem:[#allocation2 + $0x8] sm:$0xff]  ;;  %vm105_vm1 = vcmask 130048   ;;  %v462_v5 = vld [vmem:[#allocation5 + $0x40] sm:$0xff]   ;;  %v464_v7 = vld [vmem:[#allocation5 + $0x30] sm:$0xff]   ;;  %s577_s0 = smov [#allocation8]  }
  0x2a   :  { %411 = vmatprep.subr.bf16.mxu1 %v575_v0  ;;  %427 = vmatprep.mubr.msk.bf16.mxu1 %vm576_vm0, %v575_v0  ;;  %v57_v4 = vpack.c.bf16 %v56_v3, %v55_v2  ;;  %v463_v6 = vld [vmem:[#allocation5 + $0x38] sm:$0xff]   ;;  %v465_v8 = vld [vmem:[#allocation5 + $0x28] sm:$0xff]   ;;  %v466_v9 = vld [vmem:[#allocation5 + $0x20] sm:$0xff]   ;;  %s351_s2 = sshll.u32 %s577_s0, 4  ;;  %s352_s2 = int_to_ptr.vmem [resolvable:$true] %s351_s2 }
  0x2b   :  { %406 = vmatpush3.bf16.msra.mxu0 %v461_v1  ;;  %412 = vmatpush3.bf16.msra.mxu1 %v462_v5  ;;  %v467_v10 = vld [vmem:[#allocation5 + $0x18] sm:$0xff]   ;;  %v468_v11 = vld [vmem:[#allocation5 + $0x10] sm:$0xff]   ;;  %v469_v12 = vld [vmem:[#allocation5 + $0x8] sm:$0xff]   ;;  %s542_s30 = scalar_lea.vmem %s352_s2, 256  ;;  %p547_p2 = scmp.lt.s32.totalorder %s352_s2, %s352_s2 }
  0x2c   :  { %431 = vmatprep.subr.bf16.mxu0 %v575_v0  ;;  %413 = vmatprep.subr.bf16.mxu1 %v575_v0  ;;  %v470_v13 = vld [vmem:[#allocation5 + $0x80] sm:$0xff]   ;;  %v471_v14 = vld [vmem:[#allocation5 + $0x78] sm:$0xff]   ;;  %v472_v15 = vld [vmem:[#allocation5 + $0x70] sm:$0xff]   ;;  %p543_p1 = scmp.ne.s32.totalorder %s352_s2, %s542_s30  ;;  %p548_p3 = scmp.lt.s32.totalorder %s542_s30, %s542_s30 }
  0x2d   :  { %v473_v16 = vld [vmem:[#allocation5 + $0x68] sm:$0xff]   ;;  %v474_v17 = vld [vmem:[#allocation5 + $0x60] sm:$0xff]   ;;  %v475_v28 = vld [vmem:[#allocation5 + $0x58] sm:$0xff]  }
  0x2e   :  { %408 = vmatmul.mubr.msk.bf16.vlgmr.msra.gmra.mxu0 %vm105_vm1, %v57_v4  ;;  %v364_v18 = vld [vmem:[#allocation7] ss:$0 sm:$0xff]  ;;  %v476_v29 = vld [vmem:[#allocation5 + $0x50] sm:$0xff]   ;;  %v367_v31 = vld [vmem:[#allocation7 + $0x1] ss:$0 sm:$0xff]  ;;  %p549_p4 = por %p548_p3, %p547_p2 }
  0x2f   :  { %447 = vmatprep.mubr.msk.bf16.mxu0 %vm576_vm0, %v575_v0  ;;  %414 = vmatpush3.bf16.msra.mxu1 %v463_v6  ;;  %v477_v30 = vld [vmem:[#allocation5 + $0x48] sm:$0xff]  }
  0x30   :  { %415 = vmatprep.subr.bf16.mxu1 %v575_v0  ;;  %432 = vmatpush3.bf16.msra.mxu0 %v470_v13  ;;  %v376_v41 = vld [vmem:[#allocation7 + $0x2] ss:$0 sm:$0xff]  ;;  %p550_p5 = pnand %p549_p4, %p543_p1 }
  0x31   :  { %433 = vmatprep.subr.bf16.mxu0 %v575_v0 }
  0x33   :  { %416 = vmatpush3.bf16.msra.mxu1 %v464_v7 }
  0x34   :  { %417 = vmatprep.subr.bf16.mxu1 %v575_v0  ;;  %434 = vmatpush3.bf16.msra.mxu0 %v471_v14 }
  0x35   :  { %435 = vmatprep.subr.bf16.mxu0 %v575_v0 }
  0x37   :  { %418 = vmatpush3.bf16.msra.mxu1 %v465_v8 }
  0x38   :  { %419 = vmatprep.subr.bf16.mxu1 %v575_v0  ;;  %436 = vmatpush3.bf16.msra.mxu0 %v472_v15 }
  0x39   :  { %437 = vmatprep.subr.bf16.mxu0 %v575_v0 }
  0x3b   :  { %420 = vmatpush3.bf16.msra.mxu1 %v466_v9 }
  0x3c   :  { %421 = vmatprep.subr.bf16.mxu1 %v575_v0  ;;  %438 = vmatpush3.bf16.msra.mxu0 %v473_v16 }
  0x3d   :  { %439 = vmatprep.subr.bf16.mxu0 %v575_v0 }
  0x3f   :  { %422 = vmatpush3.bf16.msra.mxu1 %v467_v10 }
  0x40   :  { %423 = vmatprep.subr.bf16.mxu1 %v575_v0  ;;  %440 = vmatpush3.bf16.msra.mxu0 %v474_v17 }
  0x41   :  { %441 = vmatprep.subr.bf16.mxu0 %v575_v0 }
  0x43   :  { %424 = vmatpush3.bf16.msra.mxu1 %v468_v11 }
  0x44   :  { %425 = vmatprep.subr.bf16.mxu1 %v575_v0  ;;  %442 = vmatpush3.bf16.msra.mxu0 %v475_v28 }
  0x45   :  { %443 = vmatprep.subr.bf16.mxu0 %v575_v0 }
  0x47   :  { %426 = vmatpush3.bf16.msra.mxu1 %v469_v12 }
  0x48   :  { %444 = vmatpush3.bf16.msra.mxu0 %v476_v29 }
  0x49   :  { %445 = vmatprep.subr.bf16.mxu0 %v575_v0 }
  0x4c   :  { %446 = vmatpush3.bf16.msra.mxu0 %v477_v30 }
  0xee   :  { %v143_v19 = vpop.f32.mrf.mxu0 }
  0xef   :  { %v144_v21 = vadd.f32 %v364_v18, %v143_v19 }
  0xf0   :  { %v409_v20 = vpop.f32.mrf.mxu0 }
  0xf1   :  { %v150_v25 = vmax.f32 %v144_v21, 0.0 }
  0xf2   :  { %v146_v22 = vpop.f32.mrf.mxu0 }
  0xf3   :  { %v147_v23 = vadd.f32 %v364_v18, %v146_v22 }
  0xf4   :  { %v410_v24 = vpop.f32.mrf.mxu0 }
  0xf5   :  { %v151_v26 = vmax.f32 %v147_v23, 0.0 }
  0xf7   :  { %v152_v27 = vpack.c.bf16 %v151_v26, %v150_v25 }
  0xf9   :  { %428 = vmatmul.mubr.bf16.vlgmr.msra.gmra.mxu1 %v152_v27 }
 0x1b9   :  { %v239_v32 = vpop.f32.mrf.mxu1 }
 0x1ba   :  { %v240_v34 = vadd.f32 %v367_v31, %v239_v32 }
 0x1bb   :  { %v429_v33 = vpop.f32.mrf.mxu1 }
 0x1bc   :  { %v246_v38 = vmax.f32 %v240_v34, 0.0 }
 0x1bd   :  { %v242_v35 = vpop.f32.mrf.mxu1 }
 0x1be   :  { %v243_v36 = vadd.f32 %v367_v31, %v242_v35 }
 0x1bf   :  { %v430_v37 = vpop.f32.mrf.mxu1 }
 0x1c0   :  { %v247_v39 = vmax.f32 %v243_v36, 0.0 }
 0x1c2   :  { %v248_v40 = vpack.c.bf16 %v247_v39, %v246_v38 }
 0x1c4   :  { %448 = vmatmul.mubr.bf16.vlgmr.msra.gmra.mxu0 %v248_v40 }
 0x284   :  { %v335_v42 = vpop.f32.mrf.mxu0 }
 0x285   :  { %v336_v43 = vadd.f32 %v376_v41, %v335_v42 }
 0x286   :  { %v449_v44 = vpop.f32.mrf.mxu0 }
 0x287   :  { %478 = vtanh.f32 %v336_v43 }
 0x288   :  { %v338_v45 = vpop.f32.mrf.mxu0 }
 0x289   :  { %v339_v46 = vadd.f32 %v376_v41, %v338_v45 }
 0x28a   :  { %v450_v47 = vpop.f32.mrf.mxu0 }
 0x28b   :  { %480 = vtanh.f32 %v339_v46 }
 0x294   :  { %v479_v48 = vpop.eup %478 }
 0x295   :  { %344 = vst [vmem:[#allocation8] sm:$0xff] %v479_v48 }
 0x298   :  { %v481_v49 = vpop.eup %480 }
 0x299   :  { %345 = vst [vmem:[#allocation8 + $0x8] sm:$0xff] %v481_v49 }
 0x29a   :  { %553 = shalt.err (!%p550_p5)
}
 0x29b   :  { %357 = dma.vmem_to_hbm [thread:$0]  %s352_s2, 256, %s642_s3, [#allocation4], %s572_s22, %s572_s22, %s573_s23  }
 0x29c   :  { %566 = dma.done.wait [#allocation4], 256  }
 0x29d   :  { %567 = vsyncadd [#allocation4], 4294967040 }
 0x29e   :  { %361 = vsyncpa [#allocation3], 1 }
 0x29f   :  { %362 = vsyncpa [#allocation6], 1 }
 0x2a0   :  { %363 = vsyncpa [#allocation4], 1 }

</bundles_post_ra>
